<compile_context>
chip_gen: v7x
topology: tpu7x:2x2x1
jax: 0.10.0
libtpu: 0.0.40
codegen_flags: <defaults>
</compile_context>

<pallas_src>
import functools

import jax
import jax.numpy as jnp
from jax.experimental import pallas as pl
from jax.experimental.pallas import tpu as pltpu

_SUBLANES = 8
_LANES = 128
_MAX_BLOCK_ROWS = 1024  # (1024, 128) f32 block = 512 KiB; 2 inputs x 2 bufs ~ 2 MiB


def _smooth_l1_sum_kernel(pred_ref, targ_ref, out_ref, acc_ref, *, margin):
    """Grid = (parallel cores, reduction blocks). acc_ref is a full-block VMEM f32
    accumulator resident across the reduction axis; out_ref is a (1,1) SMEM
    per-core partial."""
    i = pl.program_id(1)

    @pl.when(i == 0)
    def _():
        acc_ref[...] = jnp.zeros_like(acc_ref)

    # Cast inside the kernel (keeps HBM traffic narrow for bf16/fp8 inputs,
    # keeps all arithmetic in f32 — important on v5e which has no bf16 VPU path).
    labs = jnp.abs(pred_ref[...].astype(jnp.float32) -
                   targ_ref[...].astype(jnp.float32))
    # loss = 0.5 * labs**2   where labs <= margin
    #        labs - 0.5      where labs >  margin
    loss = jnp.where(labs > jnp.float32(margin),
                     labs - jnp.float32(0.5),
                     jnp.float32(0.5) * labs * labs)
    # Pure elementwise accumulate in the steady state (VPU only; no XLU/scalar chain).
    acc_ref[...] += loss

    @pl.when(i == pl.num_programs(1) - 1)
    def _():
        # Single cross-lane reduce per core, once.
        out_ref[0, 0] = jnp.sum(acc_ref[...])


def continuous_loss_sl1(pred, target, margin=1.0):
    """Smooth-L1-with-margin loss, summed over all elements (matches the PyTorch
    ContinuousLoss_SL1 forward)."""
    assert pred.shape == target.shape
    # Zero padding relies on the quadratic branch (0.5 * 0**2 == 0); that only
    # holds if margin > 0 so padded zeros never take the linear branch.
    assert margin > 0, "margin must be > 0 for zero-padding correctness"

    pred_flat = jnp.ravel(pred)
    targ_flat = jnp.ravel(target)
    n = pred_flat.shape[0]

    # --- Derive a lane-dense 2D layout [rows, 128], rows a multiple of 8. ---
    rows = pl.cdiv(n, _LANES)
    rows = ((rows + _SUBLANES - 1) // _SUBLANES) * _SUBLANES
    rows = max(rows, _SUBLANES)

    if rows <= _MAX_BLOCK_ROWS:
        # Small input: one block, one grid step, one core.
        block_rows = rows
        num_par = 1
        blocks_per_par = 1
    else:
        block_rows = _MAX_BLOCK_ROWS
        num_blocks = pl.cdiv(rows, block_rows)
        # 2-way parallel axis uses both TCs on v7x; no-op elsewhere.
        num_par = 2 if num_blocks >= 2 else 1
        blocks_per_par = pl.cdiv(num_blocks, num_par)

    padded_rows = num_par * blocks_per_par * block_rows
    padded_n = padded_rows * _LANES

    pad = padded_n - n
    if pad:
        pred_flat = jnp.pad(pred_flat, (0, pad))
        targ_flat = jnp.pad(targ_flat, (0, pad))

    pred2d = pred_flat.reshape(padded_rows, _LANES)
    targ2d = targ_flat.reshape(padded_rows, _LANES)

    kernel = functools.partial(_smooth_l1_sum_kernel, margin=float(margin))

    def in_map(c, i, _bpp=blocks_per_par):
        return (c * _bpp + i, 0)

    partials = pl.pallas_call(
        kernel,
        out_shape=jax.ShapeDtypeStruct((num_par, 1), jnp.float32),
        grid_spec=pltpu.PrefetchScalarGridSpec(
            num_scalar_prefetch=0,
            grid=(num_par, blocks_per_par),
            in_specs=[
                pl.BlockSpec((block_rows, _LANES), in_map),
                pl.BlockSpec((block_rows, _LANES), in_map),
            ],
            out_specs=pl.BlockSpec((1, 1), lambda c, i: (c, 0),
                                   memory_space=pltpu.SMEM),
            scratch_shapes=[pltpu.VMEM((block_rows, _LANES), jnp.float32)],
        ),
        compiler_params=pltpu.CompilerParams(
            dimension_semantics=("parallel", "arbitrary")),
    )(pred2d, targ2d)

    return jnp.sum(partials)


def _reference(pred, target, margin=1.0):
    labs = jnp.abs(pred.astype(jnp.float32) - target.astype(jnp.float32))
    loss = jnp.where(labs > margin, labs - 0.5, 0.5 * labs * labs)
    return jnp.sum(loss)


if __name__ == "__main__":
    key = jax.random.PRNGKey(0)
    k1, k2, k3, k4 = jax.random.split(key, 4)

    # batch of 8 samples, 3 continuous emotion dims (valence/arousal/dominance)
    pred = jax.random.normal(k1, (8, 3), dtype=jnp.float32) * 2.0
    target = jax.random.normal(k2, (8, 3), dtype=jnp.float32) * 2.0

    out = continuous_loss_sl1(pred, target, margin=1.0)
    out = jax.block_until_ready(out)
    ref = _reference(pred, target, margin=1.0)
    assert jnp.allclose(out, ref, rtol=1e-5, atol=1e-5), (out, ref)

    # Low-precision inputs stay bf16 on the HBM side (cast happens in-kernel).
    pred_bf = (jax.random.normal(k3, (33, 3), dtype=jnp.float32) * 2.0).astype(jnp.bfloat16)
    targ_bf = (jax.random.normal(k4, (33, 3), dtype=jnp.float32) * 2.0).astype(jnp.bfloat16)
    out_bf = jax.block_until_ready(continuous_loss_sl1(pred_bf, targ_bf, margin=1.0))
    ref_bf = _reference(pred_bf, targ_bf, margin=1.0)
    assert jnp.allclose(out_bf, ref_bf, rtol=1e-4, atol=1e-3), (out_bf, ref_bf)

    print("KERNEL_OK")
</pallas_src>

<mosaic_0001>
module attributes {stable_mosaic.version = 11 : i64} {
  func.func @_smooth_l1_sum_kernel(%arg0: i32, %arg1: i32, %arg2: memref<8x128xf32, #tpu.memory_space<vmem>>, %arg3: memref<8x128xf32, #tpu.memory_space<vmem>>, %arg4: memref<1x1xf32, #tpu.memory_space<smem>>, %arg5: memref<8x128xf32, #tpu.memory_space<vmem>>) attributes {dimension_semantics = [#tpu.dimension_semantics<parallel>, #tpu.dimension_semantics<arbitrary>], iteration_bounds = array<i64: 1, 1>, scalar_prefetch = 0 : i64, scratch_operands = 1 : i64, tpu.core_type = #tpu.core_type<tc>, window_params = [{transform_indices = @transform_0, window_bounds = array<i64: 8, 128>}, {transform_indices = @transform_1, window_bounds = array<i64: 8, 128>}, {transform_indices = @transform_2, window_bounds = array<i64: 1, 1>}]} {
    %c0_i32 = arith.constant 0 : i32
    %0 = arith.cmpi eq, %arg1, %c0_i32 : i32
    %1 = arith.extui %0 : i1 to i32
    %c0_i32_0 = arith.constant 0 : i32
    %2 = arith.cmpi ne, %1, %c0_i32_0 : i32
    scf.if %2 {
      %cst_12 = arith.constant 0.000000e+00 : f32
      %21 = vector.broadcast %cst_12 : f32 to vector<8x128xf32>
      %c0_13 = arith.constant 0 : index
      %c0_14 = arith.constant 0 : index
      %22 = vector.load %arg5[%c0_13, %c0_14] : memref<8x128xf32, #tpu.memory_space<vmem>>, vector<8x128xf32>
      tpu.vector_store %arg5[%c0_13, %c0_14], %21 {strides = array<i32>} : memref<8x128xf32, #tpu.memory_space<vmem>>, vector<8x128xf32>,
    } else {
    }
    %c0 = arith.constant 0 : index
    %c0_1 = arith.constant 0 : index
    %3 = vector.load %arg2[%c0, %c0_1] : memref<8x128xf32, #tpu.memory_space<vmem>>, vector<8x128xf32>
    %c0_2 = arith.constant 0 : index
    %c0_3 = arith.constant 0 : index
    %4 = vector.load %arg3[%c0_2, %c0_3] : memref<8x128xf32, #tpu.memory_space<vmem>>, vector<8x128xf32>
    %5 = arith.subf %3, %4 : vector<8x128xf32>
    %6 = math.absf %5 : vector<8x128xf32>
    %cst = arith.constant 1.000000e+00 : f32
    %7 = vector.broadcast %cst : f32 to vector<8x128xf32>
    %8 = arith.cmpf ogt, %6, %7 : vector<8x128xf32>
    %cst_4 = arith.constant 5.000000e-01 : f32
    %9 = vector.broadcast %cst_4 : f32 to vector<8x128xf32>
    %10 = arith.subf %6, %9 : vector<8x128xf32>
    %cst_5 = arith.constant 5.000000e-01 : f32
    %11 = vector.broadcast %cst_5 : f32 to vector<8x128xf32>
    %12 = arith.mulf %11, %6 : vector<8x128xf32>
    %13 = arith.mulf %12, %6 : vector<8x128xf32>
    %14 = arith.select %8, %10, %13 : vector<8x128xi1>, vector<8x128xf32>
    %c0_6 = arith.constant 0 : index
    %c0_7 = arith.constant 0 : index
    %15 = vector.load %arg5[%c0_6, %c0_7] : memref<8x128xf32, #tpu.memory_space<vmem>>, vector<8x128xf32>
    %16 = arith.addf %15, %14 : vector<8x128xf32>
    %c0_8 = arith.constant 0 : index
    %c0_9 = arith.constant 0 : index
    %17 = vector.load %arg5[%c0_8, %c0_9] : memref<8x128xf32, #tpu.memory_space<vmem>>, vector<8x128xf32>
    tpu.vector_store %arg5[%c0_8, %c0_9], %16 {strides = array<i32>} : memref<8x128xf32, #tpu.memory_space<vmem>>, vector<8x128xf32>,
    %c0_i32_10 = arith.constant 0 : i32
    %18 = arith.cmpi eq, %arg1, %c0_i32_10 : i32
    %19 = arith.extui %18 : i1 to i32
    %c0_i32_11 = arith.constant 0 : i32
    %20 = arith.cmpi ne, %19, %c0_i32_11 : i32
    scf.if %20 {
      %c0_12 = arith.constant 0 : index
      %c0_13 = arith.constant 0 : index
      %21 = vector.load %arg5[%c0_12, %c0_13] : memref<8x128xf32, #tpu.memory_space<vmem>>, vector<8x128xf32>
      %22 = vector.shape_cast %21 : vector<8x128xf32> to vector<1x8x128xf32>
      %cst_14 = arith.constant dense<0.000000e+00> : vector<1xf32>
      %23 = vector.multi_reduction <add>, %22, %cst_14 [1, 2] : vector<1x8x128xf32> to vector<1xf32>
      %24 = vector.shape_cast %23 : vector<1xf32> to vector<1x1x1xf32>
      %25 = vector.extract %24[0, 0, 0] : f32 from vector<1x1x1xf32>
      %c0_15 = arith.constant 0 : index
      %c0_16 = arith.constant 0 : index
      %26 = memref.load %arg4[%c0_15, %c0_16] : memref<1x1xf32, #tpu.memory_space<smem>>
      memref.store %25, %arg4[%c0_15, %c0_16] : memref<1x1xf32, #tpu.memory_space<smem>>
    } else {
    }
    return
  }
  func.func @transform_0(%arg0: i32, %arg1: i32) -> (i32, i32) {
    %c1_i32 = arith.constant 1 : i32
    %0 = arith.muli %arg0, %c1_i32 : i32
    %1 = arith.addi %0, %arg1 : i32
    %c0_i32 = arith.constant 0 : i32
    %c0_i32_0 = arith.constant 0 : i32
    return %1, %c0_i32 : i32, i32
  }
  func.func @transform_1(%arg0: i32, %arg1: i32) -> (i32, i32) {
    %c1_i32 = arith.constant 1 : i32
    %0 = arith.muli %arg0, %c1_i32 : i32
    %1 = arith.addi %0, %arg1 : i32
    %c0_i32 = arith.constant 0 : i32
    %c0_i32_0 = arith.constant 0 : i32
    return %1, %c0_i32 : i32, i32
  }
  func.func @transform_2(%arg0: i32, %arg1: i32) -> (i32, i32) {
    %c0_i32 = arith.constant 0 : i32
    %c0_i32_0 = arith.constant 0 : i32
    return %arg0, %c0_i32 : i32, i32
  }
}

</mosaic_0001>

<bundles_post_ra>
// kernel: tpu_custom_call.1
= control target key start
LH: loop header
LB: loop body
LE: loop exit
PB: predicated region body
PF: predicated region fallthrough
CT: control target
= control target key end

     0   :  { %7 = vsyncpa [#allocation4], 0  ;;  %s211_s0 = inlined_call_operand.hbm [shape: f32[8,128], index: 0, kind: input, shape index: {}]   ;;  %s212_s1 = inlined_call_operand.hbm [shape: f32[8,128], index: 1, kind: input, shape index: {}]   ;;  %s213_s2 = inlined_call_operand.hbm [shape: f32[1,1], index: 2, kind: output, shape index: {}]  }
   0x1   :  { %8 = vsyncpa [#allocation7], 0 }
   0x2   :  { %9 = vsyncpa [#allocation5], 0  ;;  %s157_s9 = smov [#allocation3]   ;;  %s158_s11 = smov [#allocation6]  }
   0x3   :  { %s19_s10 = sshll.u32 %s157_s9, 4  ;;  %s32_s12 = sshll.u32 %s158_s11, 4  ;;  %s20_s10 = int_to_ptr.vmem [resolvable:$true] %s19_s10  ;;  %s33_s12 = int_to_ptr.vmem [resolvable:$true] %s32_s12 }
   0x4   :  { %s97_s15 = scalar_lea.hbm %s211_s0, 128 }
   0x5   :  { %p98_p0 = scmp.ne.s32.totalorder %s211_s0, %s97_s15  ;;  %p101_p1 = scmp.lt.u32.totalorder %s97_s15, %s211_s0 }
   0x7   :  { %p103_p2 = pnand %p101_p1, %p98_p0 }
   0x9   :  { %106 = shalt.err (!%p103_p2)
}
   0xa   :  { %s107_s20 = scalar_lea.vmem %s20_s10, 128  ;;  %p112_p4 = scmp.lt.s32.totalorder %s20_s10, %s20_s10 }
   0xb   :  { %p108_p3 = scmp.ne.s32.totalorder %s20_s10, %s107_s20  ;;  %p113_p5 = scmp.lt.s32.totalorder %s107_s20, %s107_s20 }
   0xd   :  { %p114_p6 = por %p113_p5, %p112_p4 }
   0xf   :  { %p115_p7 = pnand %p114_p6, %p108_p3 }
  0x11   :  { %118 = shalt.err (!%p115_p7)
}
  0x12   :  { %22 = dma.hbm_to_vmem [thread:$0]  %s211_s0, 128, %s20_s10, [#allocation4]  }
  0x13   :  { %s119_s25 = scalar_lea.hbm %s212_s1, 128 }
  0x14   :  { %p120_p8 = scmp.ne.s32.totalorder %s212_s1, %s119_s25  ;;  %p123_p9 = scmp.lt.u32.totalorder %s119_s25, %s212_s1 }
  0x16   :  { %p125_p10 = pnand %p123_p9, %p120_p8 }
  0x18   :  { %128 = shalt.err (!%p125_p10)
}
  0x19   :  { %s129_s30 = scalar_lea.vmem %s33_s12, 128  ;;  %p134_p12 = scmp.lt.s32.totalorder %s33_s12, %s33_s12 }
  0x1a   :  { %p130_p11 = scmp.ne.s32.totalorder %s33_s12, %s129_s30  ;;  %p135_p13 = scmp.lt.s32.totalorder %s129_s30, %s129_s30 }
  0x1c   :  { %p136_p0 = por %p135_p13, %p134_p12 }
  0x1e   :  { %p137_p1 = pnand %p136_p0, %p130_p11 }
  0x20   :  { %140 = shalt.err (!%p137_p1)
}
  0x21   :  { %35 = dma.hbm_to_vmem [thread:$0]  %s212_s1, 128, %s33_s12, [#allocation7]  }
  0x22   :  { %151 = dma.done.wait [#allocation4], 128  }
  0x23   :  { %152 = vsyncadd [#allocation4], 4294967168 }
  0x24   :  { %153 = dma.done.wait [#allocation7], 128  }
  0x25   :  { %154 = vsyncadd [#allocation7], 4294967168  ;;  %v49_v0 = vld [vmem:[#allocation3] sm:$0xff]  ;;  %v50_v1 = vld [vmem:[#allocation6] sm:$0xff]  ;;  %s141_s6 = scalar_lea.hbm %s213_s2, 16 }
  0x26   :  { %v51_v2 = vsub.f32 %v49_v0, %v50_v1  ;;  %p142_p2 = scmp.ne.s32.totalorder %s213_s2, %s141_s6  ;;  %p145_p3 = scmp.lt.u32.totalorder %s141_s6, %s213_s2 }
  0x28   :  { %v52_v3 = vand.u32 2147483647, %v51_v2  ;;  %p147_p4 = pnand %p145_p3, %p142_p2 }
  0x2a   :  { %v91_v4 = vadd.f32 -0.5, %v52_v3  ;;  %v55_v5 = vmul.f32 0.5, %v52_v3  ;;  %vm53_vm0 = vcmp.gt.f32.partialorder %v52_v3, 1.0 }
  0x2c   :  { %v56_v6 = vmul.f32 %v55_v5, %v52_v3 }
  0x2e   :  { %v57_v7 = vsel %vm53_vm0, %v91_v4, %v56_v6 }
  0x2f   :  { %65 = vadd.xlane.f32.xlu0 %v57_v7 }
  0xbc   :  { %v66_v8 = vpop.xlane.xlu0 %65 }
  0xbd   :  { %v67_v9 = vrot.slane %v66_v8, 4 }
  0xbf   :  { %v68_v10 = vadd.f32 %v67_v9, %v66_v8 }
  0xc1   :  { %v69_v11 = vrot.slane %v68_v10, 2 }
  0xc3   :  { %v70_v12 = vadd.f32 %v69_v11, %v68_v10 }
  0xc5   :  { %v71_v13 = vrot.slane %v70_v12, 1 }
  0xc7   :  { %v72_v14 = vadd.f32 %v71_v13, %v70_v12 }
  0xc9   :  { %92 = vpush %v72_v14 }
  0xfa   :  { %s93_s1 = spop %92 }
  0xfb   :  { %75 = sst [smem:[#allocation8]] %s93_s1 }
  0xfc   :  { %150 = shalt.err (!%p147_p4)
}
  0xfd   :  { %s159_s11 = smov [#allocation8]  }
  0xfe   :  { %83 = dma.smem_to_hbm %s159_s11, 16, %s213_s2, [#allocation5]  }
  0xff   :  { %155 = dma.done.wait [#allocation5], 16  }
 0x100   :  { %156 = vsyncadd [#allocation5], 4294967280 }
 0x101   :  { %87 = sfence }
 0x102   :  { %88 = vsyncpa [#allocation4], 1 }
 0x103   :  { %89 = vsyncpa [#allocation7], 1 }
 0x104   :  { %90 = vsyncpa [#allocation5], 1 }

</bundles_post_ra>
